<compile_context>
chip_gen: v7x
topology: tpu7x:2x2x1
jax: 0.10.0
libtpu: 0.0.40
codegen_flags: <defaults>
</compile_context>

<pallas_src>
import functools

import jax
import jax.numpy as jnp
import numpy as np
from jax.experimental import pallas as pl
from jax.experimental.pallas import tpu as pltpu


def _specaug_kernel(n_f, n_t, fparams_ref, tparams_ref, scale_ref, x_ref, o_ref):
    """One [1, F, T_TILE] tile: o = x * mult.

    mult is a (1, F, 1) multiplier equal to `scale` on kept (batch, frequency)
    positions and 0 on masked ones; it has no time dependence, so it is
    tile-invariant and cheap to rebuild per grid step.

    fparams_ref : SMEM int32[2*n_f]  -> (start, length) pairs masking dim 0 (batch)
    tparams_ref : SMEM int32[2*n_t]  -> (start, length) pairs masking dim 1 (frequency)
    scale_ref   : SMEM float32[1]    -> product of inverted factors
    x_ref/o_ref : VMEM [1, F, T_TILE]
    """
    b = pl.program_id(0)  # batch index of this block (block batch extent == 1)

    # dim-0 (batch) masks collapse to a single scalar keep/drop for this block.
    batch_keep = jnp.bool_(True)
    for i in range(n_f):
        start = fparams_ref[2 * i]
        length = fparams_ref[2 * i + 1]
        batch_keep = jnp.logical_and(
            batch_keep,
            jnp.logical_not(jnp.logical_and(b >= start, b < start + length)),
        )

    # dim-1 (frequency) masks collapse to a tiny (1, F, 1) sublane mask.
    F = x_ref.shape[1]
    f_idx = jax.lax.broadcasted_iota(jnp.int32, (1, F, 1), 1)
    freq_keep = jnp.ones((1, F, 1), dtype=jnp.bool_)
    for j in range(n_t):
        start = tparams_ref[2 * j]
        length = tparams_ref[2 * j + 1]
        freq_keep = jnp.logical_and(
            freq_keep, jnp.logical_not((f_idx >= start) & (f_idx < start + length))
        )

    keep = jnp.logical_and(freq_keep, batch_keep)
    mult = jnp.where(keep, scale_ref[0], jnp.float32(0.0)).astype(x_ref.dtype)
    o_ref[...] = (x_ref[...] * mult).astype(o_ref.dtype)


def _sample_mask_params(key, num_f, num_t, frequency, frame, rows, cols,
                        random_rows, random_cols):
    """Mirror of the torch.randint sampling with ONE vectorized jax.random call
    and a single device->host transfer (instead of ~10 synced randint calls)."""
    F = int(num_f * frequency) if frequency > 0.0 else 0
    T = int(num_t * frame) if frame > 0.0 else 0
    n_draws = 2 + 2 * int(rows) + 2 * int(cols)
    u = np.asarray(
        jax.device_get(jax.random.uniform(key, (n_draws,), dtype=jnp.float32)),
        dtype=np.float64,
    )
    cursor = [0]

    def draw(low, high):  # mirrors torch.randint(low, high, (1,)).item()
        v = float(u[cursor[0]])
        cursor[0] += 1
        return min(high - 1, low + int(v * (high - low)))

    scale = 1.0
    f_pairs, t_pairs = [], []
    if frequency > 0.0:
        multi = draw(1, rows + 1) if random_rows else rows
        for _ in range(int(multi)):
            f = draw(0, F + 1)
            f0 = draw(0, num_f - f + 1)
            scale *= num_f / (num_f - f)
            f_pairs.append((f0, f))
    if frame > 0.0:
        multi = draw(1, cols + 1) if random_cols else cols
        for _ in range(int(multi)):
            t = draw(0, T + 1)
            t0 = draw(0, num_t - t + 1)
            t_pairs.append((t0, t))
    return f_pairs, t_pairs, scale


def spec_augment(
    x,
    key,
    *,
    frequency=0.2,
    frame=0.2,
    rows=1,
    cols=1,
    random_rows=False,
    random_cols=False,
    training=True,
    enable=True,
    time_tile=1024,
    donate_input=False,
):
    """JAX/Pallas port of SpecAugment.forward (returns a new array)."""
    assert x.ndim == 3
    assert 0.0 <= frequency < 1.0
    assert 0.0 <= frame < 1.0

    if not training or not enable:
        return x
    if frequency <= 0.0 and frame <= 0.0:
        return x

    B, num_f, num_t = x.shape
    f_pairs, t_pairs, scale = _sample_mask_params(
        key, num_f, num_t, frequency, frame, rows, cols, random_rows, random_cols
    )

    # Pad to fixed, shape-stable lengths -> no recompile when random_rows /
    # random_cols changes the number of sampled masks.  (0, 0) is a no-op mask.
    n_f = max(int(rows), 1)
    n_t = max(int(cols), 1)
    f_flat = [v for p in f_pairs for v in p] + [0, 0] * (n_f - len(f_pairs))
    t_flat = [v for p in t_pairs for v in p] + [0, 0] * (n_t - len(t_pairs))

    fparams = jnp.asarray(f_flat, dtype=jnp.int32)
    tparams = jnp.asarray(t_flat, dtype=jnp.int32)
    # scale stays a runtime SMEM scalar (NOT baked at trace time) so different
    # random draws never trigger a recompile; an SMEM load per step is free.
    scale_arr = jnp.asarray([scale], dtype=jnp.float32)

    # Lane-dense time tiling: full time extent for short utterances, otherwise
    # a multiple-of-128 tile (keeps stores unmasked and VMEM use tiny:
    # 2 bufs x (in + out) x F x t_tile x itemsize << 32 MiB on all gens).
    if num_t <= time_tile:
        t_tile = num_t
    else:
        t_tile = time_tile
        assert t_tile % 128 == 0, "time_tile must be a multiple of 128"
    grid = (B, pl.cdiv(num_t, t_tile))

    kernel = functools.partial(_specaug_kernel, n_f, n_t)
    block = pl.BlockSpec((1, num_f, t_tile), lambda b, t: (b, 0, t))

    call_kwargs = {}
    if donate_input:
        # Matches the torch in-place semantics (saves the extra HBM output buffer).
        call_kwargs["input_output_aliases"] = {3: 0}

    return pl.pallas_call(
        kernel,
        out_shape=jax.ShapeDtypeStruct(x.shape, x.dtype),
        grid=grid,
        in_specs=[
            pl.BlockSpec(memory_space=pltpu.MemorySpace.SMEM),  # fparams
            pl.BlockSpec(memory_space=pltpu.MemorySpace.SMEM),  # tparams
            pl.BlockSpec(memory_space=pltpu.MemorySpace.SMEM),  # scale
            block,                                              # x tile (VMEM)
        ],
        out_specs=block,
        compiler_params=pltpu.CompilerParams(
            dimension_semantics=("parallel", "parallel")
        ),
        **call_kwargs,
    )(fparams, tparams, scale_arr, x)


def _numpy_reference(x, f_pairs, t_pairs, scale):
    """Literal emulation of the torch in-place ops, for verification."""
    out = np.array(x, dtype=np.float32)
    # frequency branch: zero dim-0 slices, then scale (zeros stay zero, so the
    # per-iteration scaling collapses to one total scale).
    for (f0, f) in f_pairs:
        out[f0:f0 + f, :] = 0.0
    out *= np.float32(scale)
    # frame branch: zero dim-1 slices.
    for (t0, t) in t_pairs:
        out[:, t0:t0 + t] = 0.0
    return out


if __name__ == "__main__":
    key = jax.random.PRNGKey(0)
    k_data, k_aug = jax.random.split(key)

    # [batch, frequency, time] — small, but exercises the (batch, time) grid.
    B, NF, NT = 2, 16, 384
    x = jax.random.normal(k_data, (B, NF, NT), dtype=jnp.float32)

    out = spec_augment(
        x, k_aug, frequency=0.2, frame=0.2, rows=1, cols=1,
        training=True, time_tile=128,          # grid = (2, 3)
    )
    out = jax.block_until_ready(out)

    # Silent correctness check against a literal numpy emulation using the SAME
    # sampled parameters (the sampler is deterministic in the key).
    f_pairs, t_pairs, scale = _sample_mask_params(
        k_aug, NF, NT, 0.2, 0.2, 1, 1, False, False
    )
    ref = _numpy_reference(np.asarray(x), f_pairs, t_pairs, scale)
    np.testing.assert_allclose(np.asarray(out), ref, rtol=1e-6, atol=1e-6)

    print("KERNEL_OK")
</pallas_src>

<mosaic_0001>
module attributes {stable_mosaic.version = 11 : i64} {
  func.func @_specaug_kernel(%arg0: i32, %arg1: i32, %arg2: memref<2xi32, #tpu.memory_space<smem>>, %arg3: memref<2xi32, #tpu.memory_space<smem>>, %arg4: memref<1xf32, #tpu.memory_space<smem>>, %arg5: memref<1x16x128xf32, #tpu.memory_space<vmem>>, %arg6: memref<1x16x128xf32, #tpu.memory_space<vmem>>) attributes {dimension_semantics = [#tpu.dimension_semantics<parallel>, #tpu.dimension_semantics<parallel>], iteration_bounds = array<i64: 2, 3>, scalar_prefetch = 0 : i64, scratch_operands = 0 : i64, tpu.core_type = #tpu.core_type<tc>, window_params = [{transform_indices = @transform_0, window_bounds = array<i64: 2>}, {transform_indices = @transform_1, window_bounds = array<i64: 2>}, {transform_indices = @transform_2, window_bounds = array<i64: 1>}, {transform_indices = @transform_3, window_bounds = array<i64: 1, 16, 128>}, {transform_indices = @transform_4, window_bounds = array<i64: 1, 16, 128>}]} {
    %c0 = arith.constant 0 : index
    %0 = memref.load %arg2[%c0] : memref<2xi32, #tpu.memory_space<smem>>
    %c1 = arith.constant 1 : index
    %1 = memref.load %arg2[%c1] : memref<2xi32, #tpu.memory_space<smem>>
    %2 = arith.cmpi sge, %arg0, %0 : i32
    %3 = arith.addi %0, %1 : i32
    %4 = arith.cmpi slt, %arg0, %3 : i32
    %5 = arith.andi %2, %4 : i1
    %true = arith.constant true
    %6 = arith.xori %5, %true : i1
    %true_0 = arith.constant true
    %7 = arith.andi %true_0, %6 : i1
    %8 = tpu.iota {dimensions = array<i32: 1>} : vector<1x16x1xi32>
    %true_1 = arith.constant true
    %9 = vector.broadcast %true_1 : i1 to vector<1x16x1xi1>
    %c0_2 = arith.constant 0 : index
    %10 = memref.load %arg3[%c0_2] : memref<2xi32, #tpu.memory_space<smem>>
    %c1_3 = arith.constant 1 : index
    %11 = memref.load %arg3[%c1_3] : memref<2xi32, #tpu.memory_space<smem>>
    %12 = vector.broadcast %10 : i32 to vector<1x16x1xi32>
    %13 = arith.cmpi sge, %8, %12 : vector<1x16x1xi32>
    %14 = arith.addi %10, %11 : i32
    %15 = vector.broadcast %14 : i32 to vector<1x16x1xi32>
    %16 = arith.cmpi slt, %8, %15 : vector<1x16x1xi32>
    %17 = arith.andi %13, %16 : vector<1x16x1xi1>
    %cst = arith.constant dense<true> : vector<1x16x1xi1>
    %18 = arith.xori %17, %cst : vector<1x16x1xi1>
    %19 = arith.andi %9, %18 : vector<1x16x1xi1>
    %20 = vector.broadcast %7 : i1 to vector<1x16x1xi1>
    %21 = arith.andi %19, %20 : vector<1x16x1xi1>
    %c0_4 = arith.constant 0 : index
    %22 = memref.load %arg4[%c0_4] : memref<1xf32, #tpu.memory_space<smem>>
    %cst_5 = arith.constant 0.000000e+00 : f32
    %23 = vector.broadcast %22 : f32 to vector<1x16x1xf32>
    %24 = vector.broadcast %cst_5 : f32 to vector<1x16x1xf32>
    %25 = arith.select %21, %23, %24 : vector<1x16x1xi1>, vector<1x16x1xf32>
    %c0_6 = arith.constant 0 : index
    %c0_7 = arith.constant 0 : index
    %c0_8 = arith.constant 0 : index
    %26 = vector.load %arg5[%c0_6, %c0_7, %c0_8] : memref<1x16x128xf32, #tpu.memory_space<vmem>>, vector<1x16x128xf32>
    %27 = vector.broadcast %25 : vector<1x16x1xf32> to vector<1x16x128xf32>
    %28 = arith.mulf %26, %27 : vector<1x16x128xf32>
    %c0_9 = arith.constant 0 : index
    %c0_10 = arith.constant 0 : index
    %c0_11 = arith.constant 0 : index
    %29 = vector.load %arg6[%c0_9, %c0_10, %c0_11] : memref<1x16x128xf32, #tpu.memory_space<vmem>>, vector<1x16x128xf32>
    tpu.vector_store %arg6[%c0_9, %c0_10, %c0_11], %28 {strides = array<i32>} : memref<1x16x128xf32, #tpu.memory_space<vmem>>, vector<1x16x128xf32>,
    return
  }
  func.func @transform_0(%arg0: i32, %arg1: i32) -> i32 {
    %c0_i32 = arith.constant 0 : i32
    %c0_i32_0 = arith.constant 0 : i32
    return %c0_i32 : i32
  }
  func.func @transform_1(%arg0: i32, %arg1: i32) -> i32 {
    %c0_i32 = arith.constant 0 : i32
    %c0_i32_0 = arith.constant 0 : i32
    return %c0_i32 : i32
  }
  func.func @transform_2(%arg0: i32, %arg1: i32) -> i32 {
    %c0_i32 = arith.constant 0 : i32
    %c0_i32_0 = arith.constant 0 : i32
    return %c0_i32 : i32
  }
  func.func @transform_3(%arg0: i32, %arg1: i32) -> (i32, i32, i32) {
    %c0_i32 = arith.constant 0 : i32
    %c0_i32_0 = arith.constant 0 : i32
    return %arg0, %c0_i32, %arg1 : i32, i32, i32
  }
  func.func @transform_4(%arg0: i32, %arg1: i32) -> (i32, i32, i32) {
    %c0_i32 = arith.constant 0 : i32
    %c0_i32_0 = arith.constant 0 : i32
    return %arg0, %c0_i32, %arg1 : i32, i32, i32
  }
}

</mosaic_0001>

<bundles_post_ra>
// kernel: tpu_custom_call.1
= control target key start
LH: loop header
LB: loop body
LE: loop exit
PB: predicated region body
PF: predicated region fallthrough
CT: control target
= control target key end

     0   :  { %s1009_s0 = inlined_call_operand.vmem [shape: s32[2], index: 0, kind: input, shape index: {}]   ;;  %s1010_s1 = inlined_call_operand.vmem [shape: s32[2], index: 1, kind: input, shape index: {}]   ;;  %s1011_s2 = inlined_call_operand.<no memory space> [shape: f32[1], index: 2, kind: input, shape index: {}]   ;;  %s1012_s3 = inlined_call_operand.hbm [shape: f32[2,16,384], index: 3, kind: input, shape index: {}]   ;;  %s1013_s4 = inlined_call_operand.hbm [shape: f32[2,16,384], index: 4, kind: output, shape index: {}]  }
   0x1   :  { %1021 = sst [smem:[#allocation16_spill]] %s1009_s0 }
   0x2   :  { %1022 = sst [smem:[#allocation17_spill]] %s1010_s1 }
   0x3   :  { %9 = sst [smem:[#allocation2]] %s1011_s2 }
   0x4   :  { %10 = vsyncpa [#allocation6], 0 }
   0x5   :  { %11 = vsyncpa [#allocation8], 0 }
   0x6   :  { %12 = vsyncpa [#allocation4], 0 }
   0x7   :  { %14 = vsyncpa [#allocation4 + $0x1], 0 }
   0x8   :  { %15 = vsyncpa [#allocation5], 0 }
   0x9   :  { %17 = vsyncpa [#allocation5 + $0x1], 0  ;;  %s759_s17 = smov 0   ;;  %s761_s18 = smov 0  }
   0xa   :  { %s763_s19 = smov 0   ;;  %s765_s20 = smov 0  }
   0xb   :  { %s767_s21 = smov 0   ;;  %s769_s22 = smov 0  }
   0xc   :  { %s771_s23 = smov 0   ;;  %s773_s2 = smov 0  }
   0xd LB: > { %s425_s24 = sadd.s32 4294967295, %s718_s2   ;;  %s426_s25 = sadd.s32 4294967294, %s718_s2   ;;  %s718_s2 = sphi %s773_s2, %s23_s2   ;;  %s714_s23 = sphi %s771_s23, %s1048_s23   ;;  %s710_s22 = sphi %s769_s22, %s1047_s22   ;;  %s706_s21 = sphi %s767_s21, %s1046_s21   ;;  %s702_s20 = sphi %s765_s20, %s1045_s20   ;;  %s698_s19 = sphi %s763_s19, %s1044_s19   ;;  %s694_s18 = sphi %s761_s18, %s1043_s18   ;;  %s690_s17 = sphi %s759_s17, %s1042_s17  }
   0xe   : > { %p114_p0 = scmp.ne.s32.totalorder %s698_s19, %s694_s18  ;;  %p115_p1 = scmp.eq.s32.totalorder %s718_s2, 0 }
   0xf   : > { %p120_p2 = scmp.ne.s32.totalorder %s694_s18, %s690_s17  ;;  %p807_p3 = scmp.eq.s32.totalorder %s425_s24, 0 }
  0x10   : > { %p146_p4 = scmp.eq.s32.totalorder %s425_s24, 5  ;;  %p811_p5 = por %p115_p1, %p114_p0 }
  0x11   : > { %s1023_s27 = scalar_select %p807_p3, 1, 0 }
  0x12   : > { %p152_p6 = scmp.eq.s32.totalorder %s426_s25, 5  ;;  %p817_p7 = por %p807_p3, %p120_p2 }
  0x13   : > { %p821_p8 = por %p146_p4, %p114_p0  ;;  %p427_p10 = scmp.ge.s32.totalorder %s718_s2, 1 }
  0x14   : > { %s1025_s29 = scalar_select %p817_p7, 1, 0 }
  0x15   : > { %s1026_s30 = scalar_select %p821_p8, 1, 0 }
  0x16   : > { %p825_p9 = por %p152_p6, %p120_p2  ;;  %p159_p11 = scmp.lt.s32.totalorder %s718_s2, 7 }
  0x17   : > { %s1028_s0 = sld [smem:[#allocation16_spill]]  ;;  %p475_p13 = scmp.lt.s32.totalorder %s718_s2, 6 }
  0x18   : > { %s1027_s5 = scalar_select %p825_p9, 1, 0 }
  0x19   : > { %p834_p12 = pnand %p427_p10, %p159_p11  ;;  %s1030_s1 = sld [smem:[#allocation17_spill]] }
  0x1a   : > { %p846_p1 = pnand %p475_p13, %p811_p5 }
  0x1b   : > { %s1029_s9 = scalar_select %p834_p12, 1, 0 }
  0x1c   : > { %p458_p0 = pneg %p834_p12 }
  0x1d   : > { %s172_s8 = sshll.u32 %s1028_s0, 4  ;;  %s173_s8 = int_to_ptr.vmem [resolvable:$true] %s172_s8 }
  0x1e   : > { %s1031_s13 = scalar_select %p846_p1, 1, 0 }
  0x1f   : > { %s183_s12 = sshll.u32 %s1030_s1, 4  ;;  %p852_p2 = pnand %p458_p0, %p807_p3  ;;  %s184_s12 = int_to_ptr.vmem [resolvable:$true] %s183_s12 }
  0x20   : > { %s552_s15 = scalar_lea.vmem %s173_s8, 16  ;;  %p560_p9 = scmp.lt.s32.totalorder %s173_s8, %s173_s8 }
  0x21   : > { %p553_p4 = scmp.ne.s32.totalorder %s173_s8, %s552_s15  ;;  %p554_p6 = pneg %p852_p2 }
  0x22   : > { %p561_p8 = scmp.lt.s32.totalorder %s552_s15, %s552_s15 }
  0x23   : > { %p555_p10 = pnand %p554_p6, %p553_p4 }
  0x24   : > { %p562_p7 = por %p561_p8, %p560_p9 }
  0x25   : > { %p556_p11 = pneg %p555_p10 }
  0x27   : > { %p563_p5 = pnand %p562_p7, %p556_p11 }
  0x29   : > { %566 = shalt.err (!%p563_p5)
}
  0x2a   : > { %s720_s16 = smov [#allocation3]   ;;  %s567_s24 = scalar_lea.vmem %s184_s12, 16 }
  0x2b   : > { %461 = dma.vmem_to_smem (!%p852_p2), %s173_s8, 16, %s720_s16, [#allocation6]  }
  0x2c   : > { %p568_p13 = scmp.ne.s32.totalorder %s184_s12, %s567_s24  ;;  %p575_p12 = scmp.lt.s32.totalorder %s184_s12, %s184_s12 }
  0x2d   : > { %p576_p1 = scmp.lt.s32.totalorder %s567_s24, %s567_s24 }
  0x2e   : > { %p570_p0 = pnand %p568_p13, %p554_p6 }
  0x2f   : > { %p577_p4 = por %p576_p1, %p575_p12 }
  0x30   : > { %p571_p3 = pneg %p570_p0 }
  0x32   : > { %p578_p10 = pnand %p577_p4, %p571_p3 }
  0x34   : > { %581 = shalt.err (!%p578_p10)
}
  0x35   : > { %s721_s25 = smov [#allocation7]   ;;  %s32_s28 = sadd.s32 1, %s710_s22 }
  0x36   : > { %464 = dma.vmem_to_smem (!%p852_p2), %s184_s12, 16, %s721_s25, [#allocation8]  }
  0x37   : > { %s35_s6 = sadd.s32 1, %s714_s23  ;;  %p33_p7 = scmp.ge.s32.totalorder %s32_s28, 3 }
  0x38   : > { %s197_s7 = sand.u32 1, %s698_s19   ;;  %s444_s11 = smul.u32 6, %s714_s23 }
  0x39   : > { %s431_s8 = sshll.u32 %s197_s7, 4  ;;  %s1050_s28 = smov (%p33_p7, %s32_s28), 0 }
  0x3a   : > { %1033 = sst [smem:[#allocation15_spill]] %s1050_s28  ;;  %s1052_s6 = smov (!%p33_p7, %s35_s6), %s714_s23 }
  0x3b   : > { %s103_s10 = ssub.s32 %s710_s22, %s1050_s28  ;;  %p37_p3 = scmp.ge.s32.totalorder %s1052_s6, 2 }
  0x3c   : > { %s201_s14 = scalar_lea.vmem [#allocation9], %s431_s8  ;;  %s206_s12 = sadd.s32 %s710_s22, %s444_s11 }
  0x3d   : > { %s209_s15 = sshll.u32 %s201_s14, 4  ;;  %s1054_s6 = smov (%p37_p3, %s1052_s6), 0  ;;  %s874_s15 = int_to_ptr.vmem [resolvable:$true] %s209_s15 }
  0x3e   : > { %s102_s16 = ssub.s32 %s714_s23, %s1054_s6  ;;  %s432_s24 = sshll.u32 %s206_s12, 7 }
  0x3f   : > { %s104_s25 = sor.u32 %s103_s10, %s102_s16  ;;  %s881_s1 = scalar_lea.hbm %s1012_s3, %s432_s24 }
  0x40   : > { %p105_p8 = scmp.eq.s32.totalorder %s104_s25, 0  ;;  %s1034_s8 = sadd.s32 1, %s698_s19 }
  0x41   : > { %s888_s28 = scalar_lea.sflag [#allocation4], %s197_s7  ;;  %s582_s11 = scalar_lea.hbm %s881_s1, 256 }
  0x42   : > { %s886_s14 = scalar_select %p105_p8, %s698_s19, %s1034_s8  }
  0x43   : > { %p583_p9 = scmp.ne.s32.totalorder %s881_s1, %s582_s11  ;;  %p1035_p12 = scmp.ne.s32.totalorder %s1031_s13, 0 }
  0x44   : > { %s587_s10 = scalar_lea.hbm %s1012_s3, 1536  ;;  %p588_p11 = scmp.lt.u32.totalorder %s881_s1, %s1012_s3 }
  0x45   : > { %p584_p1 = pneg %p1035_p12  ;;  %p589_p5 = scmp.lt.u32.totalorder %s587_s10, %s582_s11 }
  0x46   : > { %p591_p0 = scmp.lt.u32.totalorder %s582_s11, %s881_s1 }
  0x47   : > { %p585_p2 = pnand %p584_p1, %p583_p9  ;;  %p590_p13 = por %p589_p5, %p588_p11 }
  0x49   : > { %p586_p6 = pneg %p585_p2  ;;  %p592_p4 = por %p591_p0, %p590_p13 }
  0x4b   : > { %p593_p10 = pnand %p592_p4, %p586_p6 }
  0x4d   : > { %596 = shalt.err (!%p593_p10)
}
  0x4e   : > { %s597_s7 = scalar_lea.vmem %s874_s15, 256  ;;  %s722_s24 = smov [#allocation9]  }
  0x4f   : > { %p598_p7 = scmp.ne.s32.totalorder %s874_s15, %s597_s7  ;;  %s602_s25 = sshll.u32 %s722_s24, 4  ;;  %s603_s25 = int_to_ptr.vmem [resolvable:$false] %s602_s25 }
  0x50   : > { %s604_s8 = scalar_lea.vmem %s603_s25, 512  ;;  %p605_p9 = scmp.lt.s32.totalorder %s874_s15, %s603_s25 }
  0x51   : > { %p600_p3 = pnand %p598_p7, %p584_p1  ;;  %p606_p2 = scmp.lt.s32.totalorder %s604_s8, %s597_s7 }
  0x53   : > { %p601_p8 = pneg %p600_p3  ;;  %p607_p11 = por %p606_p2, %p605_p9 }
  0x55   : > { %p608_p5 = pnand %p607_p11, %p601_p8 }
  0x57   : > { %611 = shalt.err (!%p608_p5)
}
  0x58   : > { %s723_s11 = smov 384   ;;  %s724_s0 = smov 128  }
  0x59   : > { %s725_s26 = smov 8   ;;  %p1036_p1 = scmp.ne.s32.totalorder %s1029_s9, 0 }
  0x5a   : > { %468 = dma.hbm_to_vmem [thread:$0]  (!%p1035_p12), %s881_s1, 256, %s874_s15, %s888_s28, %s723_s11, %s724_s0, %s725_s26  }
  0x5b   : > { %221 = sbr.rel (%p1036_p1) target bundleno = 143 (0x8f), region = 36  ;;  %p1037_p6 = scmp.ne.s32.totalorder (!%p1036_p1), %s1023_s27, 0 }
  0x62   : > { %673 = dma.done.wait (%p1037_p6), [#allocation6], 16  }
  0x63   : > { %675 = vsyncadd (%p1037_p6), [#allocation6], 4294967280 }
  0x64   : > { %677 = dma.done.wait (%p1037_p6), [#allocation8], 16  }
  0x65   : > { %679 = vsyncadd (%p1037_p6), [#allocation8], 4294967280  ;;  %s927_s10 = sand.u32 1, %s694_s18   ;;  %p1038_p12 = scmp.ne.s32.totalorder %s1025_s29, 0 }
  0x66   : > { %s436_s1 = sshll.u32 %s927_s10, 4  ;;  %s232_s9 = scalar_lea.sflag [#allocation4], %s927_s10 }
  0x67   : > { %s933_s13 = scalar_lea.vmem [#allocation9], %s436_s1 }
  0x68   : > { %681 = dma.done.wait (%p1038_p12), %s232_s9, 256  }
  0x69   : > { %683 = vsyncadd (%p1038_p12), %s232_s9, 4294967040 }
  0x6a   : > { %240 = sfence }
  0x6b   : > { %s261_s27 = sld [smem:[#allocation3]]  ;;  %v269_v0 = vlaneseq  ;;  %s438_s28 = sld [smem:[#allocation3 + $0x1]]  ;;  %vm726_vm5 = vmmov 1   ;;  %v294_v7 = vld [vmem:[%s933_s13] sm:$0xff]  ;;  %v295_v8 = vld [vmem:[%s933_s13 + $0x8] sm:$0xff] }
  0x6c   : > { %s272_s15 = sld [smem:[#allocation7]]  ;;  %s439_s12 = sld [smem:[#allocation7 + $0x1]] }
  0x6d   : > { %v270_v1 = vshrl.u32 %v269_v0, 7  ;;  %s940_s16 = sld [smem:[#allocation2]]  ;;  %s445_s24 = smul.u32 6, %s706_s21 }
  0x6e   : > { %s260_s11 = scalar_lea.vmem [#allocation10], %s436_s1  ;;  %s301_s9 = scalar_lea.sflag [#allocation5], %s927_s10 }
  0x6f   : > { %v271_v2 = vadd.s32 8, %v270_v1  ;;  %s312_s8 = sadd.s32 %s702_s20, %s445_s24  ;;  %s315_s0 = sshll.u32 %s260_s11, 4  ;;  %s950_s0 = int_to_ptr.vmem [resolvable:$true] %s315_s0 }
  0x70   : > { %s612_s13 = scalar_lea.vmem %s950_s0, 256  ;;  %p1039_p7 = scmp.ne.s32.totalorder %s1026_s30, 0 }
  0x71   : > { %p263_p13 = scmp.ge.s32.totalorder %s706_s21, %s261_s27  ;;  %s264_s7 = sadd.s32 %s438_s28, %s261_s27 }
  0x72   : > { %v274_v3 = vstv %s272_s15  ;;  %p265_p0 = scmp.lt.s32.totalorder %s706_s21, %s264_s7  ;;  %s277_s29 = sadd.s32 %s439_s12, %s272_s15 }
  0x73   : > { %vm275_vm0 = vcmp.ge.s32.totalorder %v270_v1, %v274_v3  ;;  %v278_v4 = vstv %s277_s29  ;;  %vm276_vm2 = vcmp.ge.s32.totalorder %v271_v2, %v274_v3  ;;  %v291_v6 = vstv %s940_s16  ;;  %s441_s21 = sshll.u32 %s312_s8, 7  ;;  %p613_p10 = scmp.ne.s32.totalorder %s950_s0, %s612_s13 }
  0x74   : > { %p266_p4 = pnand %p265_p0, %p263_p13  ;;  %vm279_vm1 = vcmp.lt.s32.totalorder %v270_v1, %v278_v4  ;;  %vm280_vm3 = vcmp.lt.s32.totalorder %v271_v2, %v278_v4  ;;  %s955_s1 = scalar_lea.hbm %s1013_s4, %s441_s21 }
  0x75   : > { %vm281_vm4 = vmand %vm275_vm0, %vm279_vm1  ;;  %p614_p3 = pnand %p613_p10, %p1039_p7  ;;  %s727_s27 = smov [#allocation10]  }
  0x76   : > { %vm283_vm6 = vmxor %vm281_vm4, %vm726_vm5  ;;  %s285_s25 = scalar_select %p266_p4, 1, 0 }
  0x77   : > { %vm282_vm7 = vmand %vm276_vm2, %vm280_vm3  ;;  %p615_p8 = pneg %p614_p3  ;;  %s616_s28 = sshll.u32 %s727_s27, 4  ;;  %s617_s28 = int_to_ptr.vmem [resolvable:$false] %s616_s28 }
  0x78   : > { %v286_v5 = vstv %s285_s25  ;;  %vm284_vm8 = vmxor %vm282_vm7, %vm726_vm5  ;;  %s618_s15 = scalar_lea.vmem %s617_s28, 512  ;;  %p619_p9 = scmp.lt.s32.totalorder %s950_s0, %s617_s28 }
  0x79   : > { %vm287_vm9 = vcmp.eq.s32.totalorder %v286_v5, 1  ;;  %p620_p2 = scmp.lt.s32.totalorder %s618_s15, %s612_s13 }
  0x7a   : > { %vm288_vm10 = vmand %vm283_vm6, %vm287_vm9 }
  0x7b   : > { %v292_v9 = vsel %vm288_vm10, %v291_v6, 0.0  ;;  %vm289_vm11 = vmand %vm284_vm8, %vm287_vm9  ;;  %p621_p11 = por %p620_p2, %p619_p9 }
  0x7c   : > { %v296_v10 = vmul.f32 %v294_v7, %v292_v9  ;;  %v293_v11 = vsel %vm289_vm11, %v291_v6, 0.0 }
  0x7d   : > { %v297_v12 = vmul.f32 %v295_v8, %v293_v11  ;;  %p622_p5 = pnand %p621_p11, %p615_p8 }
  0x7e   : > { %298 = vst [vmem:[%s260_s11] sm:$0xff] %v296_v10 }
  0x7f   : > { %299 = vst [vmem:[%s260_s11 + $0x8] sm:$0xff] %v297_v12 }
  0x80   : > { %625 = shalt.err (!%p622_p5)
}
  0x81   : > { %s626_s12 = scalar_lea.hbm %s955_s1, 256  ;;  %s630_s29 = scalar_lea.hbm %s1013_s4, 1536 }
  0x82   : > { %p627_p1 = scmp.ne.s32.totalorder %s955_s1, %s626_s12  ;;  %p631_p13 = scmp.lt.u32.totalorder %s955_s1, %s1013_s4 }
  0x83   : > { %p632_p0 = scmp.lt.u32.totalorder %s630_s29, %s626_s12  ;;  %p634_p10 = scmp.lt.u32.totalorder %s626_s12, %s955_s1 }
  0x84   : > { %p628_p6 = pnand %p627_p1, %p1039_p7 }
  0x85   : > { %p633_p4 = por %p632_p0, %p631_p13 }
  0x86   : > { %p629_p12 = pneg %p628_p6 }
  0x87   : > { %p635_p3 = por %p634_p10, %p633_p4 }
  0x89   : > { %p636_p8 = pnand %p635_p3, %p629_p12 }
  0x8b   : > { %639 = shalt.err (!%p636_p8)
}
  0x8c   : > { %s728_s8 = smov 128   ;;  %s729_s11 = smov 384  }
  0x8d   : > { %s730_s21 = smov 8  }
  0x8e   : > { %456 = dma.vmem_to_hbm [thread:$0]  (%p1039_p7), %s950_s0, 256, %s955_s1, %s301_s9, %s728_s8, %s729_s11, %s730_s21  }
  0x8f PF: > { %p478_p9 = scmp.ge.s32.totalorder %s718_s2, 2  ;;  %s330_s20 = sand.u32 1, %s690_s17  }
  0x90   : > { %p1040_p2 = scmp.ne.s32.totalorder %s1027_s5, 0  ;;  %s331_s26 = scalar_lea.sflag [#allocation5], %s330_s20 }
  0x92   : > { %p470_p11 = pnand %p478_p9, %p1040_p2 }
  0x94   : > { %685 = dma.done.wait (!%p470_p11), %s331_s26, 256  }
  0x95   : > { %687 = vsyncadd (!%p470_p11), %s331_s26, 4294967040  ;;  %s23_s2 = sadd.s32 1, %s718_s2   ;;  %s1041_s30 = sld [smem:[#allocation15_spill]] }
  0x96   : > { %p20_p5 = scmp.ge.s32.totalorder %s23_s2, 8   ;;  %s1042_s17 = smov %s694_s18 }
  0x97   : > { %s1043_s18 = smov %s698_s19  ;;  %s1044_s19 = smov %s886_s14 }
  0x98   : > { %s1045_s20 = smov %s710_s22  ;;  %s1046_s21 = smov %s714_s23 }
  0x99   : > { %s1048_s23 = smov %s1054_s6  ;;  %22 = sbr.rel (!%p20_p5) target bundleno = 13 (0xd), region = 90 }
  0x9b   : > { %s1047_s22 = smov %s1041_s30 }
  0xa0   :  { %336 = vsyncpa [#allocation4], 1 }
  0xa1   :  { %338 = vsyncpa [#allocation4 + $0x1], 1 }
  0xa2   :  { %339 = vsyncpa [#allocation5], 1 }
  0xa3   :  { %341 = vsyncpa [#allocation5 + $0x1], 1 }
  0xa4   :  { %342 = vsyncpa [#allocation6], 1 }
  0xa5   :  { %344 = vsyncpa [#allocation6 + $0x1], 1 }
  0xa6   :  { %345 = vsyncpa [#allocation8], 1 }

</bundles_post_ra>
